<compile_context>
chip_gen: v6e
topology: v6e:2x2x1
jax: 0.10.0
libtpu: 0.0.40
codegen_flags: <defaults>
</compile_context>

<pallas_src>
import functools

import jax
import jax.numpy as jnp
from jax.experimental import pallas as pl
from jax.experimental.pallas import tpu as pltpu


def _cdiv(a, b):
    return (a + b - 1) // b


def _round_up(x, m):
    return ((x + m - 1) // m) * m


def _kl_align_kernel(s_ref, t_ref, out_ref, *, inv_tau):
    t = t_ref[...].astype(jnp.float32) * inv_tau
    s = s_ref[...].astype(jnp.float32) * inv_tau

    # Teacher: softmax + log-softmax sharing a single exp (EUP).
    t_max = jnp.max(t, axis=-1, keepdims=True)
    t_sh = t - t_max
    e_t = jnp.exp(t_sh)
    sum_t = jnp.sum(e_t, axis=-1, keepdims=True)
    logp_t = t_sh - jnp.log(sum_t)
    p_t = e_t * pl.reciprocal(sum_t, approx=True)

    # Student: log-softmax only.
    s_max = jnp.max(s, axis=-1, keepdims=True)
    s_sh = s - s_max
    logp_s = s_sh - jnp.log(jnp.sum(jnp.exp(s_sh), axis=-1, keepdims=True))

    kl = p_t * (logp_t - logp_s)

    # Fold rows into groups of 8 sublanes (layout-preserving reshape: the
    # leading split lands exactly on (8, 128) tile boundaries) and add them
    # with plain VALU vector adds; store an unmasked, lane-dense (8, L)
    # partial for this block.  No carried accumulator -> grid axis stays
    # "parallel" (megacore-shardable).
    out_ref[...] = jnp.sum(kl.reshape(-1, 8, kl.shape[-1]), axis=0)


def feature_knowledge_align_loss(preds_S, preds_T, tau=1.0, loss_weight=1.0):
    assert preds_S.shape[-2:] == preds_T.shape[-2:]
    N, C, H, W = preds_S.shape
    M = N * C
    L = H * W

    s2d = preds_S.reshape(M, L)
    t2d = preds_T.reshape(M, L)

    itemsize = jnp.dtype(s2d.dtype).itemsize
    sublane = max(8, 32 // itemsize)  # 8 for f32, 16 for bf16 inputs

    # ---- generation-aware, VMEM-budgeted row tile -------------------------
    try:
        vmem_cap = pltpu.get_tpu_info().vmem_capacity_bytes
    except Exception:  # pragma: no cover - conservative fallback (v7x-sized)
        vmem_cap = 64 * 1024 * 1024
    # Per-row VMEM footprint: 2 inputs x 2 pipeline buffers in the input
    # dtype, plus ~6 live f32 element-wise temps inside the body.
    bytes_per_row = L * (4 * itemsize + 6 * 4)
    input_budget = min(int(vmem_cap * 0.6), 80 * 1024 * 1024)
    tm_cap = input_budget // bytes_per_row
    tm_cap = max(sublane, min(1024, (tm_cap // sublane) * sublane))
    # TODO(synk): for pathologically large L (H*W >> 16K) a two-pass tiled
    # softmax over L would be needed; realistic feature maps fit a full row.

    # Balance rows across grid steps so padding never exceeds ~one sublane
    # group per block (instead of up to tm-1 rows with a fixed tile size).
    num_blocks = _cdiv(M, tm_cap)
    tm = _round_up(_cdiv(M, num_blocks), sublane)
    M_pad = num_blocks * tm

    if M_pad != M:
        # Padded (all-zero) rows contribute exactly 0: identical S/T rows give
        # logp_t == logp_s, so p_t * (logp_t - logp_s) == 0.
        pad = ((0, M_pad - M), (0, 0))
        s2d = jnp.pad(s2d, pad)
        t2d = jnp.pad(t2d, pad)

    vmem_limit = int(min(vmem_cap * 0.85, 110 * 1024 * 1024))

    kernel = functools.partial(_kl_align_kernel, inv_tau=1.0 / float(tau))

    cost = pl.CostEstimate(
        flops=12 * M_pad * L,
        transcendentals=2 * M_pad * L + 3 * M_pad,
        bytes_accessed=2 * M_pad * L * itemsize + num_blocks * 8 * L * 4,
    )

    partials = pl.pallas_call(
        kernel,
        out_shape=jax.ShapeDtypeStruct((num_blocks * 8, L), jnp.float32),
        grid_spec=pltpu.PrefetchScalarGridSpec(
            num_scalar_prefetch=0,
            grid=(num_blocks,),
            in_specs=[
                pl.BlockSpec((tm, L), lambda i: (i, 0)),
                pl.BlockSpec((tm, L), lambda i: (i, 0)),
            ],
            out_specs=pl.BlockSpec((8, L), lambda i: (i, 0)),
        ),
        compiler_params=pltpu.CompilerParams(
            dimension_semantics=("parallel",),
            vmem_limit_bytes=vmem_limit,
        ),
        cost_estimate=cost,
    )(s2d, t2d)

    loss = jnp.sum(partials, dtype=jnp.float32) * (tau ** 2)
    return loss_weight * loss / (C * N)


def _reference_loss(preds_S, preds_T, tau=1.0, loss_weight=1.0):
    N, C, H, W = preds_S.shape
    t = preds_T.reshape(-1, H * W).astype(jnp.float32) / tau
    s = preds_S.reshape(-1, H * W).astype(jnp.float32) / tau
    logp_t = jax.nn.log_softmax(t, axis=1)
    logp_s = jax.nn.log_softmax(s, axis=1)
    p_t = jnp.exp(logp_t)
    loss = jnp.sum(p_t * logp_t - p_t * logp_s) * tau ** 2
    return loss_weight * loss / (C * N)


if __name__ == "__main__":
    key = jax.random.PRNGKey(0)
    k1, k2 = jax.random.split(key)
    N, C, H, W = 2, 4, 16, 16
    preds_S = jax.random.normal(k1, (N, C, H, W), dtype=jnp.float32)
    preds_T = jax.random.normal(k2, (N, C, H, W), dtype=jnp.float32)

    tau = 1.0
    loss_weight = 1.0

    out = feature_knowledge_align_loss(preds_S, preds_T, tau=tau,
                                       loss_weight=loss_weight)
    out = jax.block_until_ready(out)

    ref = _reference_loss(preds_S, preds_T, tau=tau, loss_weight=loss_weight)
    # Slightly looser tolerance: the teacher softmax uses the EUP approximate
    # reciprocal (pl.reciprocal(..., approx=True)).
    assert jnp.allclose(out, ref, rtol=5e-3, atol=5e-3), (out, ref)

    print("KERNEL_OK")
</pallas_src>

<mosaic_0001>
module attributes {stable_mosaic.version = 11 : i64} {
  func.func @_kl_align_kernel(%arg0: i32, %arg1: memref<8x256xf32, #tpu.memory_space<vmem>>, %arg2: memref<8x256xf32, #tpu.memory_space<vmem>>, %arg3: memref<8x256xf32, #tpu.memory_space<vmem>>) attributes {dimension_semantics = [#tpu.dimension_semantics<parallel>], iteration_bounds = array<i64: 1>, scalar_prefetch = 0 : i64, scratch_operands = 0 : i64, tpu.core_type = #tpu.core_type<tc>, window_params = [{transform_indices = @transform_0, window_bounds = array<i64: 8, 256>}, {transform_indices = @transform_1, window_bounds = array<i64: 8, 256>}, {transform_indices = @transform_2, window_bounds = array<i64: 8, 256>}]} {
    %c0 = arith.constant 0 : index
    %c0_0 = arith.constant 0 : index
    %0 = vector.load %arg2[%c0, %c0_0] : memref<8x256xf32, #tpu.memory_space<vmem>>, vector<8x256xf32>
    %cst = arith.constant 1.000000e+00 : f32
    %1 = vector.broadcast %cst : f32 to vector<8x256xf32>
    %2 = arith.mulf %0, %1 : vector<8x256xf32>
    %c0_1 = arith.constant 0 : index
    %c0_2 = arith.constant 0 : index
    %3 = vector.load %arg1[%c0_1, %c0_2] : memref<8x256xf32, #tpu.memory_space<vmem>>, vector<8x256xf32>
    %cst_3 = arith.constant 1.000000e+00 : f32
    %4 = vector.broadcast %cst_3 : f32 to vector<8x256xf32>
    %5 = arith.mulf %3, %4 : vector<8x256xf32>
    %cst_4 = arith.constant dense<0xFF800000> : vector<8xf32>
    %6 = vector.multi_reduction <maximumf>, %2, %cst_4 [1] : vector<8x256xf32> to vector<8xf32>
    %7 = vector.shape_cast %6 : vector<8xf32> to vector<8x1xf32>
    %8 = vector.broadcast %7 : vector<8x1xf32> to vector<8x256xf32>
    %9 = arith.subf %2, %8 : vector<8x256xf32>
    %10 = math.exp %9 : vector<8x256xf32>
    %cst_5 = arith.constant dense<0.000000e+00> : vector<8xf32>
    %11 = vector.multi_reduction <add>, %10, %cst_5 [1] : vector<8x256xf32> to vector<8xf32>
    %12 = vector.shape_cast %11 : vector<8xf32> to vector<8x1xf32>
    %13 = math.log %12 : vector<8x1xf32>
    %14 = vector.broadcast %13 : vector<8x1xf32> to vector<8x256xf32>
    %15 = arith.subf %9, %14 : vector<8x256xf32>
    %16 = tpu.reciprocal %12 {approx = true} : vector<8x1xf32> -> vector<8x1xf32>
    %17 = vector.broadcast %16 : vector<8x1xf32> to vector<8x256xf32>
    %18 = arith.mulf %10, %17 : vector<8x256xf32>
    %cst_6 = arith.constant dense<0xFF800000> : vector<8xf32>
    %19 = vector.multi_reduction <maximumf>, %5, %cst_6 [1] : vector<8x256xf32> to vector<8xf32>
    %20 = vector.shape_cast %19 : vector<8xf32> to vector<8x1xf32>
    %21 = vector.broadcast %20 : vector<8x1xf32> to vector<8x256xf32>
    %22 = arith.subf %5, %21 : vector<8x256xf32>
    %23 = math.exp %22 : vector<8x256xf32>
    %cst_7 = arith.constant dense<0.000000e+00> : vector<8xf32>
    %24 = vector.multi_reduction <add>, %23, %cst_7 [1] : vector<8x256xf32> to vector<8xf32>
    %25 = vector.shape_cast %24 : vector<8xf32> to vector<8x1xf32>
    %26 = math.log %25 : vector<8x1xf32>
    %27 = vector.broadcast %26 : vector<8x1xf32> to vector<8x256xf32>
    %28 = arith.subf %22, %27 : vector<8x256xf32>
    %29 = arith.subf %15, %28 : vector<8x256xf32>
    %30 = arith.mulf %18, %29 : vector<8x256xf32>
    %31 = vector.shape_cast %30 : vector<8x256xf32> to vector<1x8x256xf32>
    %cst_8 = arith.constant dense<0.000000e+00> : vector<8x256xf32>
    %32 = vector.multi_reduction <add>, %31, %cst_8 [0] : vector<1x8x256xf32> to vector<8x256xf32>
    %c0_9 = arith.constant 0 : index
    %c0_10 = arith.constant 0 : index
    %33 = vector.load %arg3[%c0_9, %c0_10] : memref<8x256xf32, #tpu.memory_space<vmem>>, vector<8x256xf32>
    tpu.vector_store %arg3[%c0_9, %c0_10], %32 {strides = array<i32>} : memref<8x256xf32, #tpu.memory_space<vmem>>, vector<8x256xf32>,
    return
  }
  func.func @transform_0(%arg0: i32) -> (i32, i32) {
    %c0_i32 = arith.constant 0 : i32
    %c0_i32_0 = arith.constant 0 : i32
    return %arg0, %c0_i32 : i32, i32
  }
  func.func @transform_1(%arg0: i32) -> (i32, i32) {
    %c0_i32 = arith.constant 0 : i32
    %c0_i32_0 = arith.constant 0 : i32
    return %arg0, %c0_i32 : i32, i32
  }
  func.func @transform_2(%arg0: i32) -> (i32, i32) {
    %c0_i32 = arith.constant 0 : i32
    %c0_i32_0 = arith.constant 0 : i32
    return %arg0, %c0_i32 : i32, i32
  }
}

</mosaic_0001>

<bundles_post_ra>
// kernel: tpu_custom_call.1
= control target key start
LH: loop header
LB: loop body
LE: loop exit
PB: predicated region body
PF: predicated region fallthrough
CT: control target
= control target key end

     0   :  { %7 = vsyncpa [#allocation3], 0  ;;  %s209_s0 = inlined_call_operand.hbm [shape: f32[8,256], index: 0, kind: input, shape index: {}]   ;;  %s210_s1 = inlined_call_operand.hbm [shape: f32[8,256], index: 1, kind: input, shape index: {}]   ;;  %s211_s2 = inlined_call_operand.hbm [shape: f32[8,256], index: 2, kind: output, shape index: {}]  }
   0x1   :  { %8 = vsyncpa [#allocation6], 0 }
   0x2   :  { %9 = vsyncpa [#allocation4], 0  ;;  %s182_s9 = smov [#allocation2]   ;;  %s183_s11 = smov [#allocation5]  }
   0x3   :  { %s16_s10 = sshll.u32 %s182_s9, 4  ;;  %s26_s12 = sshll.u32 %s183_s11, 4  ;;  %s17_s10 = int_to_ptr.vmem [resolvable:$true] %s16_s10  ;;  %s27_s12 = int_to_ptr.vmem [resolvable:$true] %s26_s12 }
   0x4   :  { %s124_s13 = scalar_lea.vmem %s17_s10, 256  ;;  %p129_p1 = scmp.lt.s32.totalorder %s17_s10, %s17_s10 }
   0x5   :  { %p125_p0 = scmp.ne.s32.totalorder %s17_s10, %s124_s13  ;;  %p130_p2 = scmp.lt.s32.totalorder %s124_s13, %s124_s13 }
   0x7   :  { %p131_p3 = por %p130_p2, %p129_p1 }
   0x9   :  { %p132_p4 = pnand %p131_p3, %p125_p0 }
   0xb   :  { %135 = shalt.err (!%p132_p4)
}
   0xc   :  { %19 = dma.hbm_to_vmem [thread:$0]  %s209_s0, 256, %s17_s10, [#allocation3]  }
   0xd   :  { %s144_s16 = scalar_lea.vmem %s27_s12, 256  ;;  %p149_p6 = scmp.lt.s32.totalorder %s27_s12, %s27_s12 }
   0xe   :  { %p145_p5 = scmp.ne.s32.totalorder %s27_s12, %s144_s16  ;;  %p150_p7 = scmp.lt.s32.totalorder %s144_s16, %s144_s16 }
  0x10   :  { %p151_p8 = por %p150_p7, %p149_p6 }
  0x12   :  { %p152_p9 = pnand %p151_p8, %p145_p5 }
  0x14   :  { %155 = shalt.err (!%p152_p9)
}
  0x15   :  { %29 = dma.hbm_to_vmem [thread:$0]  %s210_s1, 256, %s27_s12, [#allocation6]  }
  0x16   :  { %176 = dma.done.wait [#allocation3], 256  }
  0x17   :  { %177 = vsyncadd [#allocation3], 4294967040 }
  0x18   :  { %178 = dma.done.wait [#allocation6], 256  }
  0x19   :  { %179 = vsyncadd [#allocation6], 4294967040  ;;  %v36_v0 = vld [vmem:[#allocation5] sm:$0xff]  ;;  %v37_v1 = vld [vmem:[#allocation5 + $0x8] sm:$0xff]  ;;  %s184_s0 = smov [#allocation7]  }
  0x1a   :  { %v38_v2 = vld [vmem:[#allocation2] sm:$0xff]  ;;  %v40_v3 = vmax.f32 %v36_v0, %v37_v1  ;;  %v39_v4 = vld [vmem:[#allocation2 + $0x8] sm:$0xff]  ;;  %s89_s1 = sshll.u32 %s184_s0, 4  ;;  %s90_s1 = int_to_ptr.vmem [resolvable:$true] %s89_s1 }
  0x1b   :  { %v59_v5 = vmax.f32 %v38_v2, %v39_v4  ;;  %s156_s19 = scalar_lea.vmem %s90_s1, 256  ;;  %p161_p11 = scmp.lt.s32.totalorder %s90_s1, %s90_s1 }
  0x1c   :  { %41 = vmax.xlane.f32.xlu0 %v40_v3  ;;  %p157_p10 = scmp.ne.s32.totalorder %s90_s1, %s156_s19  ;;  %p162_p12 = scmp.lt.s32.totalorder %s156_s19, %s156_s19 }
  0x1e   :  { %p163_p13 = por %p162_p12, %p161_p11 }
  0x20   :  { %60 = vmax.xlane.f32.xlu0 %v59_v5  ;;  %p164_p0 = pnand %p163_p13, %p157_p10 }
  0xa5   :  { %v42_v6 = vpop.xlane.xlu0 %41 }
  0xa6   :  { %v43_v7 = vsub.f32 %v36_v0, %v42_v6  ;;  %v44_v8 = vsub.f32 %v37_v1, %v42_v6 }
  0xa8   :  { %v45_v9 = vmul.f32 1.442695, %v43_v7  ;;  %v47_v10 = vmul.f32 1.442695, %v44_v8 }
  0xa9   :  { %v61_v11 = vpop.xlane.xlu0 %60 }
  0xaa   :  { %102 = vpow2.f32 %v45_v9  ;;  %v62_v12 = vsub.f32 %v38_v2, %v61_v11  ;;  %v63_v13 = vsub.f32 %v39_v4, %v61_v11 }
  0xab   :  { %104 = vpow2.f32 %v47_v10 }
  0xac   :  { %v64_v14 = vmul.f32 1.442695, %v62_v12  ;;  %v66_v15 = vmul.f32 1.442695, %v63_v13 }
  0xae   :  { %106 = vpow2.f32 %v64_v14 }
  0xaf   :  { %108 = vpow2.f32 %v66_v15 }
  0xb7   :  { %v103_v16 = vpop.eup %102 }
  0xb8   :  { %v105_v17 = vpop.eup %104 }
  0xb9   :  { %v49_v18 = vadd.f32 %v105_v17, %v103_v16 }
  0xbb   :  { %v107_v19 = vpop.eup %106  ;;  %50 = vadd.xlane.f32.xlu1 %v49_v18 }
  0xbc   :  { %v109_v20 = vpop.eup %108 }
  0xbd   :  { %v68_v21 = vadd.f32 %v109_v20, %v107_v19 }
  0xbf   :  { %69 = vadd.xlane.f32.xlu1 %v68_v21 }
 0x144   :  { %v51_v22 = vpop.xlane.xlu1 %50 }
 0x145   :  { %110 = vlog2.f32 %v51_v22 }
 0x148   :  { %v70_v23 = vpop.xlane.xlu1 %69 }
 0x149   :  { %112 = vlog2.f32 %v70_v23 }
 0x14a   :  { %114 = vrcp.f32 %v51_v22 }
 0x152   :  { %v111_v24 = vpop.eup %110 }
 0x153   :  { %v53_v25 = vmul.f32 0.6931472, %v111_v24 }
 0x155   :  { %v54_v29 = vsub.f32 %v43_v7, %v53_v25  ;;  %v55_v30 = vsub.f32 %v44_v8, %v53_v25 }
 0x156   :  { %v113_v26 = vpop.eup %112 }
 0x157   :  { %v72_v27 = vmul.f32 0.6931472, %v113_v26  ;;  %v115_v28 = vpop.eup %114 }
 0x158   :  { %v57_v35 = vmul.f32 %v115_v28, %v103_v16  ;;  %v58_v36 = vmul.f32 %v115_v28, %v105_v17 }
 0x159   :  { %v73_v31 = vsub.f32 %v62_v12, %v72_v27  ;;  %v74_v32 = vsub.f32 %v63_v13, %v72_v27 }
 0x15b   :  { %v75_v33 = vsub.f32 %v54_v29, %v73_v31  ;;  %v76_v34 = vsub.f32 %v55_v30, %v74_v32 }
 0x15d   :  { %v77_v37 = vmul.f32 %v75_v33, %v57_v35  ;;  %v78_v38 = vmul.f32 %v76_v34, %v58_v36 }
 0x15f   :  { %81 = vst [vmem:[#allocation7] sm:$0xff] %v77_v37  ;;  %82 = vst [vmem:[#allocation7 + $0x8] sm:$0xff] %v78_v38 }
 0x160   :  { %167 = shalt.err (!%p164_p0)
}
 0x161   :  { %92 = dma.vmem_to_hbm [thread:$0]  %s90_s1, 256, %s211_s2, [#allocation4]  }
 0x162   :  { %180 = dma.done.wait [#allocation4], 256  }
 0x163   :  { %181 = vsyncadd [#allocation4], 4294967040 }
 0x164   :  { %96 = vsyncpa [#allocation3], 1 }
 0x165   :  { %97 = vsyncpa [#allocation6], 1 }
 0x166   :  { %98 = vsyncpa [#allocation4], 1 }

</bundles_post_ra>
